<compile_context>
chip_gen: v5e
topology: v5e:2x2
jax: 0.10.0
libtpu: 0.0.40
codegen_flags: <defaults>
</compile_context>

<pallas_src>
import numpy as np
import jax
import jax.numpy as jnp
from jax import lax
from jax.experimental import pallas as pl
from jax.experimental.pallas import tpu as pltpu


def _round_up(x, m):
    return (x + m - 1) // m * m


def actor_kernel(x_ref, w1_ref, b1_ref, w2_ref, b2_ref, w3t_ref, b3_ref, o_ref):
    cdt = w1_ref.dtype
    # In-kernel cast f32 -> bf16 (free on the VPU, saves a wrapper HBM pass).
    x = x_ref[...].astype(cdt)                                          # (tb, obs)
    # fc1 + relu: bf16 MXU operands, f32 accumulate, f32 epilogue.
    h1 = jnp.dot(x, w1_ref[...], preferred_element_type=jnp.float32)    # (tb, hid)
    h1 = jnp.maximum(h1 + b1_ref[...], 0.0)
    # fc2 + relu
    h2 = jnp.dot(h1.astype(cdt), w2_ref[...],
                 preferred_element_type=jnp.float32)                    # (tb, hid)
    h2 = jnp.maximum(h2 + b2_ref[...], 0.0)
    # fc3 computed transposed: h3^T = W3^T @ h2^T via contraction of the
    # trailing dims (the q @ k^T pattern) -> lane axis becomes the batch.
    h3t = lax.dot_general(w3t_ref[...], h2.astype(cdt),
                          dimension_numbers=(((1,), (1,)), ((), ())),
                          preferred_element_type=jnp.float32)           # (act_pad, tb)
    # bias + tanh on the packed (act_pad, tb) block -> lane-dense store.
    o_ref[...] = jnp.tanh(h3t + b3_ref[...]).astype(o_ref.dtype)


def actor_forward(x, params, *, tile_b=2048, compute_dtype=jnp.bfloat16):
    """x: (B, obs_dim) float32. params: (in,out) weights, (1,out) biases."""
    w1, b1 = params["w1"], params["b1"]
    w2, b2 = params["w2"], params["b2"]
    w3, b3 = params["w3"], params["b3"]

    B, obs_dim = x.shape
    hidden = w1.shape[1]
    act_dim = w3.shape[1]

    # ---- packed output: pad act_dim only to 8 sublanes; store transposed ----
    act_pad = _round_up(act_dim, 8)
    w3t = jnp.zeros((act_pad, hidden), w3.dtype).at[:act_dim, :].set(w3.T)
    b3t = jnp.zeros((act_pad, 1), jnp.float32).at[:act_dim, 0].set(b3.reshape(-1))

    # MXU operands in bf16; biases stay f32 (added post-accumulation).
    w1c = w1.astype(compute_dtype)
    w2c = w2.astype(compute_dtype)
    w3tc = w3t.astype(compute_dtype)
    b1f = b1.astype(jnp.float32)
    b2f = b2.astype(jnp.float32)

    # ---- batch tile: lane axis of the packed output -> multiple of 128.
    # For mid-size batches keep >=2 grid steps so v7x's 2 TCs can share work.
    half = _round_up(max(1, -(-B // 2)), 128)
    tb = max(128, _round_up(min(tile_b, half), 128))
    padded_b = _round_up(B, tb)
    xs = x if padded_b == B else jnp.pad(x, ((0, padded_b - B), (0, 0)))
    grid = (padded_b // tb,)

    x_spec = pl.BlockSpec((tb, obs_dim), lambda i: (i, 0))
    out_spec = pl.BlockSpec((act_pad, tb), lambda i: (0, i))

    def resident(arr):
        # Whole array as one block, same block every grid step -> stays in VMEM.
        return pl.BlockSpec(arr.shape, lambda i: (0, 0))

    out = pl.pallas_call(
        actor_kernel,
        out_shape=jax.ShapeDtypeStruct((act_pad, padded_b), jnp.float32),
        grid=grid,
        in_specs=[
            x_spec,
            resident(w1c), resident(b1f),
            resident(w2c), resident(b2f),
            resident(w3tc), resident(b3t),
        ],
        out_specs=out_spec,
        compiler_params=pltpu.CompilerParams(
            dimension_semantics=("parallel",)),  # batch tiles shard across v7x's 2 TCs
    )(xs, w1c, b1f, w2c, b2f, w3tc, b3t)

    # Cheap slice/transpose of an (8, B) packed block back to (B, act_dim).
    return out[:act_dim, :B].T


def init_actor_params(key, obs_dim, act_dim, hidden):
    """Deterministic init mimicking nn.Linear's uniform(-1/sqrt(fan_in), ...).
    Weights stored already transposed to (in, out); biases kept 2D (1, out)."""
    ks = jax.random.split(key, 6)

    def lin(kw, kb, fan_in, fan_out):
        bound = 1.0 / np.sqrt(fan_in)
        w = jax.random.uniform(kw, (fan_in, fan_out), jnp.float32, -bound, bound)
        b = jax.random.uniform(kb, (1, fan_out), jnp.float32, -bound, bound)
        return w, b

    w1, b1 = lin(ks[0], ks[1], obs_dim, hidden)
    w2, b2 = lin(ks[2], ks[3], hidden, hidden)
    w3, b3 = lin(ks[4], ks[5], hidden, act_dim)
    return dict(w1=w1, b1=b1, w2=w2, b2=b2, w3=w3, b3=b3)


def _reference(x, p):
    h1 = jnp.maximum(x @ p["w1"] + p["b1"], 0.0)
    h2 = jnp.maximum(h1 @ p["w2"] + p["b2"], 0.0)
    return jnp.tanh(h2 @ p["w3"] + p["b3"])


if __name__ == "__main__":
    key = jax.random.PRNGKey(0)
    k_x, k_x2, k_x3, k_p = jax.random.split(key, 4)

    obs_dim = 16      # observation_shape = (16,)
    act_dim = 4       # action_shape = (4,)
    hidden = 32       # hidden_size
    params = init_actor_params(k_p, obs_dim, act_dim, hidden)

    # Case 1: tiny batch (B=2) — single grid step, exercises batch padding +
    # packed-output slice/transpose.
    x = jax.random.normal(k_x, (2, obs_dim), dtype=jnp.float32)
    out = jax.block_until_ready(actor_forward(x, params))
    ref = _reference(x, params)
    assert out.shape == (2, act_dim)
    np.testing.assert_allclose(np.asarray(out), np.asarray(ref),
                               rtol=2e-2, atol=2e-2)

    # Case 2: small batch with a user tile_b that would be sublane-illegal —
    # wrapper forces tb to a legal multiple of 128.
    x2 = jax.random.normal(k_x2, (48, obs_dim), dtype=jnp.float32)
    out2 = jax.block_until_ready(actor_forward(x2, params, tile_b=16))
    ref2 = _reference(x2, params)
    assert out2.shape == (48, act_dim)
    np.testing.assert_allclose(np.asarray(out2), np.asarray(ref2),
                               rtol=2e-2, atol=2e-2)

    # Case 3: multi-tile batch (grid of 3 steps) — exercises the pipelined
    # batch grid and the non-divisible tail padding.
    x3 = jax.random.normal(k_x3, (300, obs_dim), dtype=jnp.float32)
    out3 = jax.block_until_ready(actor_forward(x3, params, tile_b=128))
    ref3 = _reference(x3, params)
    assert out3.shape == (300, act_dim)
    np.testing.assert_allclose(np.asarray(out3), np.asarray(ref3),
                               rtol=2e-2, atol=2e-2)

    print("KERNEL_OK")
</pallas_src>

<mosaic_0001>
module attributes {stable_mosaic.version = 11 : i64} {
  func.func @actor_kernel(%arg0: i32, %arg1: memref<128x16xf32, #tpu.memory_space<vmem>>, %arg2: memref<16x32xbf16, #tpu.memory_space<vmem>>, %arg3: memref<1x32xf32, #tpu.memory_space<vmem>>, %arg4: memref<32x32xbf16, #tpu.memory_space<vmem>>, %arg5: memref<1x32xf32, #tpu.memory_space<vmem>>, %arg6: memref<8x32xbf16, #tpu.memory_space<vmem>>, %arg7: memref<8x1xf32, #tpu.memory_space<vmem>>, %arg8: memref<8x128xf32, #tpu.memory_space<vmem>>) attributes {dimension_semantics = [#tpu.dimension_semantics<parallel>], iteration_bounds = array<i64: 1>, scalar_prefetch = 0 : i64, scratch_operands = 0 : i64, tpu.core_type = #tpu.core_type<tc>, window_params = [{transform_indices = @transform_0, window_bounds = array<i64: 128, 16>}, {pipeline_mode = #tpu.pipeline_mode<synchronous>, transform_indices = @transform_1, window_bounds = array<i64: 16, 32>}, {pipeline_mode = #tpu.pipeline_mode<synchronous>, transform_indices = @transform_2, window_bounds = array<i64: 1, 32>}, {pipeline_mode = #tpu.pipeline_mode<synchronous>, transform_indices = @transform_3, window_bounds = array<i64: 32, 32>}, {pipeline_mode = #tpu.pipeline_mode<synchronous>, transform_indices = @transform_4, window_bounds = array<i64: 1, 32>}, {pipeline_mode = #tpu.pipeline_mode<synchronous>, transform_indices = @transform_5, window_bounds = array<i64: 8, 32>}, {pipeline_mode = #tpu.pipeline_mode<synchronous>, transform_indices = @transform_6, window_bounds = array<i64: 8, 1>}, {transform_indices = @transform_7, window_bounds = array<i64: 8, 128>}]} {
    %c0 = arith.constant 0 : index
    %c0_0 = arith.constant 0 : index
    %0 = vector.load %arg1[%c0, %c0_0] : memref<128x16xf32, #tpu.memory_space<vmem>>, vector<128x16xf32>
    %1 = arith.truncf %0 : vector<128x16xf32> to vector<128x16xbf16>
    %c0_1 = arith.constant 0 : index
    %c0_2 = arith.constant 0 : index
    %2 = vector.load %arg2[%c0_1, %c0_2] : memref<16x32xbf16, #tpu.memory_space<vmem>>, vector<16x32xbf16>
    %cst = arith.constant dense<0.000000e+00> : vector<128x32xf32>
    %3 = tpu.matmul %1, %2, %cst {dimension_numbers = #tpu.dot_dimension_numbers<[1], [0], [0], [1], [0, 0, 1, 1], [], []>} : vector<128x16xbf16>, vector<16x32xbf16>, vector<128x32xf32> -> vector<128x32xf32>
    %c0_3 = arith.constant 0 : index
    %c0_4 = arith.constant 0 : index
    %4 = vector.load %arg3[%c0_3, %c0_4] : memref<1x32xf32, #tpu.memory_space<vmem>>, vector<1x32xf32>
    %5 = vector.broadcast %4 : vector<1x32xf32> to vector<128x32xf32>
    %6 = arith.addf %3, %5 : vector<128x32xf32>
    %cst_5 = arith.constant 0.000000e+00 : f32
    %7 = vector.broadcast %cst_5 : f32 to vector<128x32xf32>
    %8 = arith.maximumf %6, %7 : vector<128x32xf32>
    %9 = arith.truncf %8 : vector<128x32xf32> to vector<128x32xbf16>
    %c0_6 = arith.constant 0 : index
    %c0_7 = arith.constant 0 : index
    %10 = vector.load %arg4[%c0_6, %c0_7] : memref<32x32xbf16, #tpu.memory_space<vmem>>, vector<32x32xbf16>
    %cst_8 = arith.constant dense<0.000000e+00> : vector<128x32xf32>
    %11 = tpu.matmul %9, %10, %cst_8 {dimension_numbers = #tpu.dot_dimension_numbers<[1], [0], [0], [1], [0, 0, 1, 1], [], []>} : vector<128x32xbf16>, vector<32x32xbf16>, vector<128x32xf32> -> vector<128x32xf32>
    %c0_9 = arith.constant 0 : index
    %c0_10 = arith.constant 0 : index
    %12 = vector.load %arg5[%c0_9, %c0_10] : memref<1x32xf32, #tpu.memory_space<vmem>>, vector<1x32xf32>
    %13 = vector.broadcast %12 : vector<1x32xf32> to vector<128x32xf32>
    %14 = arith.addf %11, %13 : vector<128x32xf32>
    %cst_11 = arith.constant 0.000000e+00 : f32
    %15 = vector.broadcast %cst_11 : f32 to vector<128x32xf32>
    %16 = arith.maximumf %14, %15 : vector<128x32xf32>
    %c0_12 = arith.constant 0 : index
    %c0_13 = arith.constant 0 : index
    %17 = vector.load %arg6[%c0_12, %c0_13] : memref<8x32xbf16, #tpu.memory_space<vmem>>, vector<8x32xbf16>
    %18 = arith.truncf %16 : vector<128x32xf32> to vector<128x32xbf16>
    %cst_14 = arith.constant dense<0.000000e+00> : vector<8x128xf32>
    %19 = tpu.matmul %17, %18, %cst_14 {dimension_numbers = #tpu.dot_dimension_numbers<[1], [1], [0], [0], [0, 0, 1, 0], [], []>} : vector<8x32xbf16>, vector<128x32xbf16>, vector<8x128xf32> -> vector<8x128xf32>
    %c0_15 = arith.constant 0 : index
    %c0_16 = arith.constant 0 : index
    %20 = vector.load %arg7[%c0_15, %c0_16] : memref<8x1xf32, #tpu.memory_space<vmem>>, vector<8x1xf32>
    %21 = vector.broadcast %20 : vector<8x1xf32> to vector<8x128xf32>
    %22 = arith.addf %19, %21 : vector<8x128xf32>
    %23 = math.tanh %22 : vector<8x128xf32>
    %c0_17 = arith.constant 0 : index
    %c0_18 = arith.constant 0 : index
    %24 = vector.load %arg8[%c0_17, %c0_18] : memref<8x128xf32, #tpu.memory_space<vmem>>, vector<8x128xf32>
    tpu.vector_store %arg8[%c0_17, %c0_18], %23 {strides = array<i32>} : memref<8x128xf32, #tpu.memory_space<vmem>>, vector<8x128xf32>,
    return
  }
  func.func @transform_0(%arg0: i32) -> (i32, i32) {
    %c0_i32 = arith.constant 0 : i32
    %c0_i32_0 = arith.constant 0 : i32
    return %arg0, %c0_i32 : i32, i32
  }
  func.func @transform_1(%arg0: i32) -> (i32, i32) {
    %c0_i32 = arith.constant 0 : i32
    %c0_i32_0 = arith.constant 0 : i32
    %c0_i32_1 = arith.constant 0 : i32
    return %c0_i32, %c0_i32_0 : i32, i32
  }
  func.func @transform_2(%arg0: i32) -> (i32, i32) {
    %c0_i32 = arith.constant 0 : i32
    %c0_i32_0 = arith.constant 0 : i32
    %c0_i32_1 = arith.constant 0 : i32
    return %c0_i32, %c0_i32_0 : i32, i32
  }
  func.func @transform_3(%arg0: i32) -> (i32, i32) {
    %c0_i32 = arith.constant 0 : i32
    %c0_i32_0 = arith.constant 0 : i32
    %c0_i32_1 = arith.constant 0 : i32
    return %c0_i32, %c0_i32_0 : i32, i32
  }
  func.func @transform_4(%arg0: i32) -> (i32, i32) {
    %c0_i32 = arith.constant 0 : i32
    %c0_i32_0 = arith.constant 0 : i32
    %c0_i32_1 = arith.constant 0 : i32
    return %c0_i32, %c0_i32_0 : i32, i32
  }
  func.func @transform_5(%arg0: i32) -> (i32, i32) {
    %c0_i32 = arith.constant 0 : i32
    %c0_i32_0 = arith.constant 0 : i32
    %c0_i32_1 = arith.constant 0 : i32
    return %c0_i32, %c0_i32_0 : i32, i32
  }
  func.func @transform_6(%arg0: i32) -> (i32, i32) {
    %c0_i32 = arith.constant 0 : i32
    %c0_i32_0 = arith.constant 0 : i32
    %c0_i32_1 = arith.constant 0 : i32
    return %c0_i32, %c0_i32_0 : i32, i32
  }
  func.func @transform_7(%arg0: i32) -> (i32, i32) {
    %c0_i32 = arith.constant 0 : i32
    %c0_i32_0 = arith.constant 0 : i32
    return %c0_i32, %arg0 : i32, i32
  }
}

</mosaic_0001>

<bundles_post_ra>
// kernel: tpu_custom_call.1
= control target key start
LH: loop header
LB: loop body
LE: loop exit
PB: predicated region body
PF: predicated region fallthrough
CT: control target
= control target key end

     0   :  { %vm64_vm0 = vcmask 130048   ;;  %s555_s0 = inlined_call_operand.vmem [shape: f32[128,16], index: 0, kind: input, shape index: {}]   ;;  %s556_s1 = inlined_call_operand.vmem [shape: bf16[16,32], index: 1, kind: input, shape index: {}]   ;;  %s557_s2 = inlined_call_operand.vmem [shape: f32[1,32], index: 2, kind: input, shape index: {}]   ;;  %s558_s3 = inlined_call_operand.vmem [shape: bf16[32,32], index: 3, kind: input, shape index: {}]   ;;  %s559_s4 = inlined_call_operand.vmem [shape: f32[1,32], index: 4, kind: input, shape index: {}]   ;;  %s560_s5 = inlined_call_operand.vmem [shape: bf16[8,32], index: 5, kind: input, shape index: {}]   ;;  %s561_s6 = inlined_call_operand.vmem [shape: f32[8,1], index: 6, kind: input, shape index: {}]   ;;  %s562_s7 = inlined_call_operand.hbm [shape: f32[8,128], index: 7, kind: output, shape index: {}]  }
   0x1   :  { %v374_v0 = vld [vmem:[%s556_s1] sm:$0xff]  ;;  %v29_v2 = vld [vmem:[%s555_s0 + $0x8] sm:$0xff] }
   0x2   :  { %v28_v1 = vld [vmem:[%s555_s0] sm:$0xff]  ;;  %96 = vmatpush.bf16.msra.mxu0 %v374_v0  ;;  %377 = vmatpush.bf16.msra.mxu3 %v374_v0 }
   0x3   :  { %v44_v3 = vpack.c.bf16 %v29_v2, %v28_v1 }
   0x4   :  { %12 = vsyncpa [#allocation3], 0  ;;  %v30_v4 = vld [vmem:[%s555_s0 + $0x10] sm:$0xff]  ;;  %v31_v5 = vld [vmem:[%s555_s0 + $0x18] sm:$0xff]  ;;  %vm182_vm1 = vcmask 261120   ;;  %s336_s21 = sshll.u32 %s562_s7, 4  ;;  %s337_s21 = int_to_ptr.hbm [resolvable:$true] %s336_s21 }
   0x5   :  { %349 = vmatmul.msk.bf16.vlgmr.msra.gmra.mxu0 %vm64_vm0, %v44_v3  ;;  %v45_v6 = vpack.c.bf16 %v31_v5, %v30_v4  ;;  %v32_v7 = vld [vmem:[%s555_s0 + $0x20] sm:$0xff]  ;;  %v33_v8 = vld [vmem:[%s555_s0 + $0x28] sm:$0xff]  ;;  %v34_v10 = vld [vmem:[%s555_s0 + $0x30] sm:$0xff] }
   0x6   :  { %v46_v9 = vpack.c.bf16 %v33_v8, %v32_v7  ;;  %v35_v11 = vld [vmem:[%s555_s0 + $0x38] sm:$0xff]  ;;  %v40_v13 = vld [vmem:[%s555_s0 + $0x60] sm:$0xff]  ;;  %v41_v14 = vld [vmem:[%s555_s0 + $0x68] sm:$0xff] }
   0x7   :  { %v47_v12 = vpack.c.bf16 %v35_v11, %v34_v10  ;;  %v50_v15 = vpack.c.bf16 %v41_v14, %v40_v13  ;;  %v36_v16 = vld [vmem:[%s555_s0 + $0x40] sm:$0xff]  ;;  %v37_v17 = vld [vmem:[%s555_s0 + $0x48] sm:$0xff]  ;;  %v42_v18 = vld [vmem:[%s555_s0 + $0x70] sm:$0xff] }
   0x8   :  { %v43_v19 = vld [vmem:[%s555_s0 + $0x78] sm:$0xff]  ;;  %v48_v20 = vpack.c.bf16 %v37_v17, %v36_v16  ;;  %v38_v22 = vld [vmem:[%s555_s0 + $0x50] sm:$0xff]  ;;  %v376_v25 = vld [vmem:[%s558_s3 + $0x8] sm:$0xff] }
   0x9   :  { %355 = vmatmul.msk.bf16.vlgmr.msra.gmra.mxu3 %vm64_vm0, %v50_v15  ;;  %v51_v21 = vpack.c.bf16 %v43_v19, %v42_v18  ;;  %v39_v23 = vld [vmem:[%s555_s0 + $0x58] sm:$0xff]  ;;  %213 = vmatpush.bf16.msra.mxu1 %v376_v25  ;;  %v375_v26 = vld [vmem:[%s558_s3] sm:$0xff] }
   0xa   :  { %v49_v24 = vpack.c.bf16 %v39_v23, %v38_v22  ;;  %378 = vmatpush.bf16.msrb.mxu3 %v376_v25  ;;  %v383_v28 = vld [vmem:[%s557_s2] ss:$0 sm:$0xff] }
   0xd   :  { %214 = vmatpush.bf16.msra.mxu1 %v375_v26 }
   0xe   :  { %379 = vmatpush.bf16.msrb.mxu3 %v375_v26 }
  0x15   :  { %350 = vmatmul.msk.bf16.gmra.mxu0 %vm64_vm0, %v45_v6 }
  0x19   :  { %356 = vmatmul.msk.bf16.gmra.mxu3 %vm64_vm0, %v51_v21  ;;  %v384_v21 = vld [vmem:[%s559_s4] ss:$0 sm:$0xff] }
  0x25   :  { %351 = vmatmul.msk.bf16.gmra.mxu0 %vm64_vm0, %v46_v9 }
  0x35   :  { %352 = vmatmul.msk.bf16.gmra.mxu0 %vm64_vm0, %v47_v12 }
  0x45   :  { %353 = vmatmul.msk.bf16.gmra.mxu0 %vm64_vm0, %v48_v20 }
  0x55   :  { %354 = vmatmul.msk.bf16.gmra.mxu0 %vm64_vm0, %v49_v24 }
  0x82   :  { %v98_v27 = vpop.f32.mrf.mxu0 }
  0x83   :  { %v99_v29 = vadd.f32 %v383_v28, %v98_v27 }
  0x85   :  { %v138_v32 = vmax.f32 %v99_v29, 0.0 }
  0x8a   :  { %v100_v30 = vpop.f32.mrf.mxu0 }
  0x8b   :  { %v101_v31 = vadd.f32 %v383_v28, %v100_v30 }
  0x8c   :  { %v128_v0 = vpop.f32.mrf.mxu3 }
  0x8d   :  { %v139_v33 = vmax.f32 %v101_v31, 0.0  ;;  %v129_v8 = vadd.f32 %v383_v28, %v128_v0 }
  0x8f   :  { %v154_v34 = vpack.c.bf16 %v139_v33, %v138_v32  ;;  %v150_v11 = vmax.f32 %v129_v8, 0.0 }
  0x91   :  { %365 = vmatmul.msk.bf16.vlgmr.msra.gmra.mxu1 %vm182_vm1, %v154_v34 }
  0x92   :  { %v103_v35 = vpop.f32.mrf.mxu0 }
  0x93   :  { %v104_v36 = vadd.f32 %v383_v28, %v103_v35 }
  0x94   :  { %v130_v7 = vpop.f32.mrf.mxu3 }
  0x95   :  { %v140_v39 = vmax.f32 %v104_v36, 0.0  ;;  %v131_v9 = vadd.f32 %v383_v28, %v130_v7 }
  0x97   :  { %v151_v12 = vmax.f32 %v131_v9, 0.0 }
  0x99   :  { %v160_v13 = vpack.c.bf16 %v151_v12, %v150_v11 }
  0x9a   :  { %v105_v37 = vpop.f32.mrf.mxu0 }
  0x9b   :  { %v106_v38 = vadd.f32 %v383_v28, %v105_v37 }
  0x9c   :  { %v133_v10 = vpop.f32.mrf.mxu3 }
  0x9d   :  { %v141_v40 = vmax.f32 %v106_v38, 0.0  ;;  %v134_v15 = vadd.f32 %v383_v28, %v133_v10 }
  0x9f   :  { %v155_v41 = vpack.c.bf16 %v141_v40, %v140_v39  ;;  %v152_v17 = vmax.f32 %v134_v15, 0.0 }
  0xa1   :  { %366 = vmatmul.msk.bf16.gmra.mxu1 %vm182_vm1, %v155_v41 }
  0xa2   :  { %v108_v42 = vpop.f32.mrf.mxu0 }
  0xa3   :  { %v109_v43 = vadd.f32 %v383_v28, %v108_v42 }
  0xa4   :  { %v135_v14 = vpop.f32.mrf.mxu3 }
  0xa5   :  { %v142_v46 = vmax.f32 %v109_v43, 0.0  ;;  %v136_v16 = vadd.f32 %v383_v28, %v135_v14 }
  0xa7   :  { %v153_v18 = vmax.f32 %v136_v16, 0.0  ;;  %v281_v16 = vld [vmem:[%s561_s6] sm:$0xff]  ;;  %s414_s6 = smov [#allocation2]  }
  0xa8   :  { %s334_s18 = sshll.u32 %s414_s6, 4  ;;  %s335_s18 = int_to_ptr.vmem [resolvable:$true] %s334_s18 }
  0xa9   :  { %v161_v19 = vpack.c.bf16 %v153_v18, %v152_v17  ;;  %v413_v17 = vmov 0  }
  0xaa   :  { %v110_v44 = vpop.f32.mrf.mxu0  ;;  %382 = vset.pattern.permute.xlu0 %v413_v17 }
  0xab   :  { %v111_v45 = vadd.f32 %v383_v28, %v110_v44  ;;  %284 = vperm.xlu0 %382, %v281_v16  }
  0xad   :  { %v143_v47 = vmax.f32 %v111_v45, 0.0 }
  0xaf   :  { %v156_v48 = vpack.c.bf16 %v143_v47, %v142_v46 }
  0xb1   :  { %367 = vmatmul.msk.bf16.gmra.mxu1 %vm182_vm1, %v156_v48 }
  0xb2   :  { %v113_v49 = vpop.f32.mrf.mxu0 }
  0xb3   :  { %v114_v50 = vadd.f32 %v383_v28, %v113_v49 }
  0xb5   :  { %v144_v53 = vmax.f32 %v114_v50, 0.0 }
  0xba   :  { %v115_v51 = vpop.f32.mrf.mxu0 }
  0xbb   :  { %v116_v52 = vadd.f32 %v383_v28, %v115_v51 }
  0xbd   :  { %v145_v54 = vmax.f32 %v116_v52, 0.0 }
  0xbf   :  { %v157_v55 = vpack.c.bf16 %v145_v54, %v144_v53 }
  0xc1   :  { %368 = vmatmul.msk.bf16.gmra.mxu1 %vm182_vm1, %v157_v55 }
  0xc2   :  { %v118_v56 = vpop.f32.mrf.mxu0 }
  0xc3   :  { %v119_v57 = vadd.f32 %v383_v28, %v118_v56 }
  0xc5   :  { %v146_v60 = vmax.f32 %v119_v57, 0.0 }
  0xca   :  { %v120_v58 = vpop.f32.mrf.mxu0 }
  0xcb   :  { %v121_v59 = vadd.f32 %v383_v28, %v120_v58 }
  0xcd   :  { %v147_v61 = vmax.f32 %v121_v59, 0.0 }
  0xcf   :  { %v158_v62 = vpack.c.bf16 %v147_v61, %v146_v60 }
  0xd1   :  { %369 = vmatmul.msk.bf16.gmra.mxu1 %vm182_vm1, %v158_v62 }
  0xd2   :  { %v123_v63 = vpop.f32.mrf.mxu0 }
  0xd3   :  { %v124_v1 = vadd.f32 %v383_v28, %v123_v63 }
  0xd5   :  { %v148_v4 = vmax.f32 %v124_v1, 0.0 }
  0xda   :  { %v125_v2 = vpop.f32.mrf.mxu0 }
  0xdb   :  { %v126_v3 = vadd.f32 %v383_v28, %v125_v2 }
  0xdd   :  { %v149_v5 = vmax.f32 %v126_v3, 0.0 }
  0xdf   :  { %v159_v6 = vpack.c.bf16 %v149_v5, %v148_v4 }
  0xe1   :  { %370 = vmatmul.msk.bf16.vlgmr.msrb.gmra.mxu3 %vm182_vm1, %v159_v6 }
  0xf1   :  { %371 = vmatmul.msk.bf16.gmra.mxu3 %vm182_vm1, %v160_v13 }
 0x101   :  { %372 = vmatmul.msk.bf16.gmra.mxu3 %vm182_vm1, %v161_v19 }
 0x10e   :  { %v216_v20 = vpop.f32.mrf.mxu1 }
 0x10f   :  { %v217_v22 = vadd.f32 %v384_v21, %v216_v20 }
 0x111   :  { %v256_v25 = vmax.f32 %v217_v22, 0.0 }
 0x116   :  { %v218_v23 = vpop.f32.mrf.mxu1 }
 0x117   :  { %v219_v24 = vadd.f32 %v384_v21, %v218_v23  ;;  %v272_v23 = vld [vmem:[%s560_s5] sm:$0xf] }
 0x119   :  { %v257_v26 = vmax.f32 %v219_v24, 0.0 }
 0x11b   :  { %v534_v27 = vpack.c.bf16 %v257_v26, %v256_v25 }
 0x11d   :  { %v285_v24 = vpop.permute.xlu0 %284 }
 0x11e   :  { %v221_v29 = vpop.f32.mrf.mxu1 }
 0x11f   :  { %v222_v30 = vadd.f32 %v384_v21, %v221_v29 }
 0x121   :  { %v258_v32 = vmax.f32 %v222_v30, 0.0 }
 0x126   :  { %v223_v28 = vpop.f32.mrf.mxu1 }
 0x127   :  { %v224_v31 = vadd.f32 %v384_v21, %v223_v28 }
 0x129   :  { %v259_v33 = vmax.f32 %v224_v31, 0.0 }
 0x12b   :  { %v274_v34 = vpack.c.bf16 %v259_v33, %v258_v32 }
 0x12d   :  { %v294_v22 = vsel %vm182_vm1, %v274_v34, 0 }
 0x12e   :  { %v226_v36 = vpop.f32.mrf.mxu1 }
 0x12f   :  { %v227_v13 = vadd.f32 %v384_v21, %v226_v36 }
 0x131   :  { %v260_v18 = vmax.f32 %v227_v13, 0.0 }
 0x136   :  { %v228_v38 = vpop.f32.mrf.mxu1 }
 0x137   :  { %v229_v11 = vadd.f32 %v384_v21, %v228_v38 }
 0x139   :  { %v261_v14 = vmax.f32 %v229_v11, 0.0 }
 0x13b   :  { %v275_v19 = vpack.c.bf16 %v261_v14, %v260_v18 }
 0x13d   :  { %v297_v20 = vsel %vm182_vm1, %v275_v19, 0 }
 0x13e   :  { %v231_v41 = vpop.f32.mrf.mxu1 }
 0x13f   :  { %v232_v7 = vadd.f32 %v384_v21, %v231_v41 }
 0x141   :  { %v262_v10 = vmax.f32 %v232_v7, 0.0 }
 0x146   :  { %v233_v43 = vpop.f32.mrf.mxu1 }
 0x147   :  { %v234_v5 = vadd.f32 %v384_v21, %v233_v43 }
 0x149   :  { %v263_v8 = vmax.f32 %v234_v5, 0.0 }
 0x14b   :  { %v276_v12 = vpack.c.bf16 %v263_v8, %v262_v10 }
 0x14d   :  { %v300_v15 = vsel %vm182_vm1, %v276_v12, 0 }
 0x14e   :  { %v236_v52 = vpop.f32.mrf.mxu1 }
 0x14f   :  { %v237_v1 = vadd.f32 %v384_v21, %v236_v52 }
 0x151   :  { %v264_v4 = vmax.f32 %v237_v1, 0.0 }
 0x156   :  { %v238_v61 = vpop.f32.mrf.mxu1 }
 0x157   :  { %v239_v63 = vadd.f32 %v384_v21, %v238_v61 }
 0x159   :  { %v265_v2 = vmax.f32 %v239_v63, 0.0 }
 0x15b   :  { %v277_v6 = vpack.c.bf16 %v265_v2, %v264_v4 }
 0x15d   :  { %v303_v9 = vsel %vm182_vm1, %v277_v6, 0 }
 0x164   :  { %v241_v35 = vpop.f32.mrf.mxu3 }
 0x165   :  { %v242_v58 = vadd.f32 %v384_v21, %v241_v35 }
 0x167   :  { %v266_v62 = vmax.f32 %v242_v58, 0.0 }
 0x16c   :  { %v243_v37 = vpop.f32.mrf.mxu3 }
 0x16d   :  { %v244_v56 = vadd.f32 %v384_v21, %v243_v37 }
 0x16f   :  { %v267_v59 = vmax.f32 %v244_v56, 0.0 }
 0x171   :  { %v278_v0 = vpack.c.bf16 %v267_v59, %v266_v62 }
 0x173   :  { %v306_v3 = vsel %vm182_vm1, %v278_v0, 0 }
 0x174   :  { %v246_v39 = vpop.f32.mrf.mxu3 }
 0x175   :  { %v247_v50 = vadd.f32 %v384_v21, %v246_v39 }
 0x177   :  { %v268_v55 = vmax.f32 %v247_v50, 0.0 }
 0x17c   :  { %v248_v40 = vpop.f32.mrf.mxu3 }
 0x17d   :  { %v249_v47 = vadd.f32 %v384_v21, %v248_v40 }
 0x17f   :  { %v269_v53 = vmax.f32 %v249_v47, 0.0 }
 0x181   :  { %v279_v57 = vpack.c.bf16 %v269_v53, %v268_v55 }
 0x183   :  { %v309_v60 = vsel %vm182_vm1, %v279_v57, 0 }
 0x184   :  { %v251_v42 = vpop.f32.mrf.mxu3 }
 0x185   :  { %v252_v44 = vadd.f32 %v384_v21, %v251_v42 }
 0x187   :  { %v270_v48 = vmax.f32 %v252_v44, 0.0 }
 0x18c   :  { %v253_v45 = vpop.f32.mrf.mxu3 }
 0x18d   :  { %v254_v46 = vadd.f32 %v384_v21, %v253_v45  ;;  %v291_v21 = vsel %vm182_vm1, %v534_v27, 0 }
 0x18f   :  { %v271_v49 = vmax.f32 %v254_v46, 0.0 }
 0x191   :  { %v280_v51 = vpack.c.bf16 %v271_v49, %v270_v48 }
 0x193   :  { %v312_v54 = vsel %vm182_vm1, %v280_v51, 0 }
 0x194   :  { %314 = vmatpush.bf16.xpose.msra.mxu2 %v312_v54 }
 0x19c   :  { %315 = vmatpush.bf16.xpose.msra.mxu2 %v309_v60 }
 0x1a4   :  { %316 = vmatpush.bf16.xpose.msra.mxu2 %v306_v3 }
 0x1ac   :  { %317 = vmatpush.bf16.xpose.msra.mxu2 %v303_v9 }
 0x1b4   :  { %318 = vmatpush.bf16.xpose.msra.mxu2 %v300_v15 }
 0x1bc   :  { %319 = vmatpush.bf16.xpose.msra.mxu2 %v297_v20 }
 0x1c4   :  { %320 = vmatpush.bf16.xpose.msra.mxu2 %v294_v22 }
 0x1cc   :  { %321 = vmatpush.bf16.xpose.msra.mxu2 %v291_v21 }
 0x1d3   :  { %373 = vmatmul.msk.bf16.vlgmr.msra.gmra.mxu2 %vm182_vm1, %v272_v23 }
 0x256   :  { %v323_v25 = vpop.f32.mrf.mxu2 }
 0x257   :  { %v324_v26 = vadd.f32 %v323_v25, %v285_v24 }
 0x259   :  { %385 = vtanh.f32 %v324_v26 }
 0x25e   :  { %v325_v29 = vpop.f32.mrf.mxu2 }
 0x25f   :  { %v386_v27 = vpop.eup %385 }
 0x260   :  { %328 = vst [vmem:[#allocation2] sm:$0xff] %v386_v27 }
 0x261   :  { %339 = dma.vmem_to_hbm [thread:$0]  %s335_s18, 128, %s337_s21, [#allocation3]  }
 0x262   :  { %411 = dma.done.wait [#allocation3], 128  }
 0x263   :  { %412 = vsyncadd [#allocation3], 4294967168 }
 0x264   :  { %344 = vsyncpa [#allocation3], 1 }

</bundles_post_ra>
